<compile_context>
chip_gen: v7x
topology: tpu7x:2x2x1
jax: 0.10.0
libtpu: 0.0.40
codegen_flags: <defaults>
</compile_context>

<pallas_src>
import numpy as np
import jax
import jax.numpy as jnp
from jax.experimental import pallas as pl
from jax.experimental.pallas import tpu as pltpu


def _softplus(x):
    # numerically stable softplus: max(x,0) + log1p(exp(-|x|))
    return jnp.maximum(x, 0.0) + jnp.log1p(jnp.exp(-jnp.abs(x)))


def _round_up(x, m):
    return ((x + m - 1) // m) * m


def _choose_tiling(B, tile_b):
    """Pick (padded batch, batch tile). Tile is a multiple of 8; grid >= 2 when possible."""
    if B >= 2 * tile_b:
        TB = tile_b
    elif B >= 16:
        # two blocks -> both TensorCores on v7x, still amortizes per-step overhead
        TB = _round_up(-(-B // 2), 8)
    else:
        TB = _round_up(B, 8)
    B_pad = _round_up(B, TB)
    return B_pad, TB


def _make_kernel(n_hidden_layers, d_out_pad):
    """Fused MLP kernel: x -> input layer -> hidden layers -> fused [mu | var] head."""

    def kernel(*refs):
        x_ref, w_in_ref, b_in_ref = refs[0], refs[1], refs[2]
        x = jnp.dot(x_ref[...], w_in_ref[...], preferred_element_type=jnp.float32)
        x = jnp.maximum(x + b_in_ref[...], 0.0)

        idx = 3
        for _ in range(n_hidden_layers):
            w_ref, b_ref = refs[idx], refs[idx + 1]
            idx += 2
            x = jnp.dot(x, w_ref[...], preferred_element_type=jnp.float32)
            x = jnp.maximum(x + b_ref[...], 0.0)

        w_head_ref, b_head_ref, lv_ref = refs[idx], refs[idx + 1], refs[idx + 2]
        out_ref = refs[idx + 3]

        # single fused head matmul: columns [0:d_out_pad] = mean, [d_out_pad:] = logvar
        h = jnp.dot(x, w_head_ref[...], preferred_element_type=jnp.float32) + b_head_ref[...]
        mu = h[:, :d_out_pad]            # lane-aligned static slices
        logvar = h[:, d_out_pad:]

        max_lv = lv_ref[0]               # SMEM scalars
        min_lv = lv_ref[1]
        logvar = max_lv - _softplus(max_lv - logvar)
        logvar = min_lv + _softplus(logvar - min_lv)

        out_ref[...] = jnp.concatenate([mu, jnp.exp(logvar)], axis=-1).astype(out_ref.dtype)

    return kernel


def hardware_conditioned_forward(state_list, action_list, state_output_lens,
                                 limb_type_list, params, cfg, *, tile_b=512):
    """Pallas equivalent of hardware_conditioned_model.forward."""
    msil = cfg["max_state_input_lens"]
    mal = cfg["max_action_lens"]
    msol = cfg["max_state_output_lens"]
    num_limb_types = cfg["num_limb_types"]
    num_limbs = cfg["num_limbs"]

    B = state_list[0].shape[0]

    # ---- input assembly (plain-JAX glue, all static shapes) ----
    s = [jnp.pad(st.astype(jnp.float32), ((0, 0), (0, msil[i] - st.shape[-1])))
         for i, st in enumerate(state_list)]
    a = [jnp.pad(ac.astype(jnp.float32), ((0, 0), (0, mal[i] - ac.shape[-1])))
         for i, ac in enumerate(action_list)]
    onehot = np.zeros((num_limb_types, num_limbs), np.float32)
    for limb, limb_type in enumerate(limb_type_list):
        onehot[limb_type, limb] = 1.0
    limbs = jnp.broadcast_to(jnp.asarray(onehot.reshape(-1)),
                             (B, num_limb_types * num_limbs))
    x = jnp.concatenate(s + a + [limbs], axis=-1)
    d_in = x.shape[1]

    # ---- fused, lane-dense head weights: [ mu (padded to 128k) | var (padded to 128k) ] ----
    w_in, b_in = params["input"]
    w_mu, b_mu = params["mean"]
    w_var, b_var = params["var"]
    d_out = w_mu.shape[1]
    d_out_pad = max(128, _round_up(d_out, 128))
    pad_cols = ((0, 0), (0, d_out_pad - d_out))
    w_head = jnp.concatenate([jnp.pad(w_mu, pad_cols), jnp.pad(w_var, pad_cols)], axis=1)
    b_head = jnp.concatenate([jnp.pad(b_mu, pad_cols), jnp.pad(b_var, pad_cols)], axis=1)
    lv_bounds = jnp.stack([params["max_logvar"].reshape(()),
                           params["min_logvar"].reshape(())])  # (2,) -> SMEM scalars

    n_hidden = len(params["hidden"])

    # ---- batch tiling ----
    B_pad, TB = _choose_tiling(B, tile_b)
    if B_pad != B:
        x = jnp.pad(x, ((0, B_pad - B), (0, 0)))
    grid = (B_pad // TB,)

    flat_in = [x, w_in, b_in]
    for (w, b) in params["hidden"]:
        flat_in += [w, b]
    flat_in += [w_head, b_head, lv_bounds]

    def full_spec(arr):
        nd = arr.ndim
        return pl.BlockSpec(arr.shape, lambda i, _nd=nd: (0,) * _nd)

    in_specs = [pl.BlockSpec((TB, d_in), lambda i: (i, 0))]
    in_specs += [full_spec(arr) for arr in flat_in[1:-1]]          # weights / biases (VMEM-resident)
    in_specs += [pl.BlockSpec(memory_space=pltpu.MemorySpace.SMEM)]  # logvar bounds as SMEM scalars

    out = pl.pallas_call(
        _make_kernel(n_hidden, d_out_pad),
        grid=grid,
        in_specs=in_specs,
        out_specs=pl.BlockSpec((TB, 2 * d_out_pad), lambda i: (i, 0)),
        out_shape=jax.ShapeDtypeStruct((B_pad, 2 * d_out_pad), jnp.float32),
        compiler_params=pltpu.CompilerParams(dimension_semantics=("parallel",)),
    )(*flat_in)

    mu_full = out[:B, :d_out]
    var_full = out[:B, d_out_pad:d_out_pad + d_out]

    # ---- per-limb output split/slice (static glue, matches torch.split + slice + cat) ----
    mu_parts, var_parts = [], []
    off = 0
    for i in range(len(state_output_lens)):
        n = state_output_lens[i]
        mu_parts.append(mu_full[:, off:off + n])
        var_parts.append(var_full[:, off:off + n])
        off += msol[i]
    mu = jnp.concatenate(mu_parts, axis=-1)
    var = jnp.concatenate(var_parts, axis=-1)
    return mu, var


def init_params(key, cfg, n_hidden_layers=2, hidden_layer_size=32):
    """Deterministic init mirroring nn.Linear default (U(-1/sqrt(fan_in), 1/sqrt(fan_in)))."""
    msil, mal, msol = cfg["max_state_input_lens"], cfg["max_action_lens"], cfg["max_state_output_lens"]
    d_in = sum(msil) + sum(mal) + cfg["num_limb_types"] * cfg["num_limbs"]
    d_out = sum(msol)

    def linear(k, fan_in, fan_out):
        k1, k2 = jax.random.split(k)
        bound = 1.0 / np.sqrt(fan_in)
        w = jax.random.uniform(k1, (fan_in, fan_out), jnp.float32, -bound, bound)
        b = jax.random.uniform(k2, (1, fan_out), jnp.float32, -bound, bound)
        return w, b

    keys = jax.random.split(key, 3 + n_hidden_layers)
    params = {
        "input": linear(keys[0], d_in, hidden_layer_size),
        "hidden": [linear(keys[1 + i], hidden_layer_size, hidden_layer_size)
                   for i in range(n_hidden_layers)],
        "mean": linear(keys[1 + n_hidden_layers], hidden_layer_size, d_out),
        "var": linear(keys[2 + n_hidden_layers], hidden_layer_size, d_out),
        "max_logvar": jnp.array(1.0, jnp.float32) / 2.0,    # torch.tensor(1)/2
        "min_logvar": jnp.array(-1.0, jnp.float32) * 10.0,  # torch.tensor(-1)*10
    }
    return params


def reference_forward(state_list, action_list, state_output_lens, limb_type_list, params, cfg):
    """Plain-JAX reference matching the PyTorch forward exactly."""
    msil, mal, msol = cfg["max_state_input_lens"], cfg["max_action_lens"], cfg["max_state_output_lens"]
    num_limb_types, num_limbs = cfg["num_limb_types"], cfg["num_limbs"]
    B = state_list[0].shape[0]

    s = [jnp.pad(st.astype(jnp.float32), ((0, 0), (0, msil[i] - st.shape[-1])))
         for i, st in enumerate(state_list)]
    a = [jnp.pad(ac.astype(jnp.float32), ((0, 0), (0, mal[i] - ac.shape[-1])))
         for i, ac in enumerate(action_list)]
    onehot = np.zeros((num_limb_types, num_limbs), np.float32)
    for limb, limb_type in enumerate(limb_type_list):
        onehot[limb_type, limb] = 1.0
    limbs = jnp.broadcast_to(jnp.asarray(onehot.reshape(-1)), (B, num_limb_types * num_limbs))
    x = jnp.concatenate(s + a + [limbs], axis=-1)

    w, b = params["input"]
    x = jax.nn.relu(x @ w + b)
    for w, b in params["hidden"]:
        x = jax.nn.relu(x @ w + b)
    wm, bm = params["mean"]
    mu = x @ wm + bm
    wv, bv = params["var"]
    logvar = x @ wv + bv
    max_lv, min_lv = params["max_logvar"], params["min_logvar"]
    logvar = max_lv - jax.nn.softplus(max_lv - logvar)
    logvar = min_lv + jax.nn.softplus(logvar - min_lv)
    var = jnp.exp(logvar)

    mu_parts, var_parts = [], []
    off = 0
    for i in range(len(state_output_lens)):
        n = state_output_lens[i]
        mu_parts.append(mu[:, off:off + n])
        var_parts.append(var[:, off:off + n])
        off += msol[i]
    return jnp.concatenate(mu_parts, -1), jnp.concatenate(var_parts, -1)


if __name__ == "__main__":
    # Small synthetic config: 2 limb "slots" for state/action, 3 limb types, 6 limbs.
    cfg = dict(max_state_input_lens=[6, 5],
               max_action_lens=[2, 3],
               max_state_output_lens=[6, 5],
               num_limb_types=3,
               num_limbs=6)
    n_hidden_layers = 2
    hidden_layer_size = 32
    batch = 30                       # not a multiple of the tile -> exercises batch padding
    state_output_lens = [4, 5]       # first output slot truncated -> exercises output slicing
    limb_type_list = [0, 1, 2, 0, 1, 2]

    key = jax.random.PRNGKey(0)
    kp, k1, k2, k3, k4 = jax.random.split(key, 5)
    params = init_params(kp, cfg, n_hidden_layers, hidden_layer_size)

    # state_list[0] is shorter than its max length -> exercises input zero-padding
    state_list = [jax.random.normal(k1, (batch, 4), jnp.float32),
                  jax.random.normal(k2, (batch, 5), jnp.float32)]
    action_list = [jax.random.normal(k3, (batch, 2), jnp.float32),
                   jax.random.normal(k4, (batch, 3), jnp.float32)]

    mu, var = hardware_conditioned_forward(state_list, action_list, state_output_lens,
                                           limb_type_list, params, cfg)
    jax.block_until_ready((mu, var))

    mu_ref, var_ref = reference_forward(state_list, action_list, state_output_lens,
                                        limb_type_list, params, cfg)
    assert mu.shape == mu_ref.shape and var.shape == var_ref.shape, "shape mismatch"
    assert jnp.allclose(mu, mu_ref, rtol=1e-5, atol=1e-5), "mu mismatch"
    assert jnp.allclose(var, var_ref, rtol=1e-5, atol=1e-5), "var mismatch"

    print("KERNEL_OK")
</pallas_src>

<mosaic_0001>
module attributes {stable_mosaic.version = 11 : i64} {
  func.func @kernel(%arg0: i32, %arg1: memref<16x34xf32, #tpu.memory_space<vmem>>, %arg2: memref<34x32xf32, #tpu.memory_space<vmem>>, %arg3: memref<1x32xf32, #tpu.memory_space<vmem>>, %arg4: memref<32x32xf32, #tpu.memory_space<vmem>>, %arg5: memref<1x32xf32, #tpu.memory_space<vmem>>, %arg6: memref<32x32xf32, #tpu.memory_space<vmem>>, %arg7: memref<1x32xf32, #tpu.memory_space<vmem>>, %arg8: memref<32x256xf32, #tpu.memory_space<vmem>>, %arg9: memref<1x256xf32, #tpu.memory_space<vmem>>, %arg10: memref<2xf32, #tpu.memory_space<smem>>, %arg11: memref<16x256xf32, #tpu.memory_space<vmem>>) attributes {dimension_semantics = [#tpu.dimension_semantics<parallel>], iteration_bounds = array<i64: 2>, scalar_prefetch = 0 : i64, scratch_operands = 0 : i64, tpu.core_type = #tpu.core_type<tc>, window_params = [{transform_indices = @transform_0, window_bounds = array<i64: 16, 34>}, {pipeline_mode = #tpu.pipeline_mode<synchronous>, transform_indices = @transform_1, window_bounds = array<i64: 34, 32>}, {pipeline_mode = #tpu.pipeline_mode<synchronous>, transform_indices = @transform_2, window_bounds = array<i64: 1, 32>}, {pipeline_mode = #tpu.pipeline_mode<synchronous>, transform_indices = @transform_3, window_bounds = array<i64: 32, 32>}, {pipeline_mode = #tpu.pipeline_mode<synchronous>, transform_indices = @transform_4, window_bounds = array<i64: 1, 32>}, {pipeline_mode = #tpu.pipeline_mode<synchronous>, transform_indices = @transform_5, window_bounds = array<i64: 32, 32>}, {pipeline_mode = #tpu.pipeline_mode<synchronous>, transform_indices = @transform_6, window_bounds = array<i64: 1, 32>}, {pipeline_mode = #tpu.pipeline_mode<synchronous>, transform_indices = @transform_7, window_bounds = array<i64: 32, 256>}, {pipeline_mode = #tpu.pipeline_mode<synchronous>, transform_indices = @transform_8, window_bounds = array<i64: 1, 256>}, {transform_indices = @transform_9, window_bounds = array<i64: 2>}, {transform_indices = @transform_10, window_bounds = array<i64: 16, 256>}]} {
    %c0 = arith.constant 0 : index
    %c0_0 = arith.constant 0 : index
    %0 = vector.load %arg1[%c0, %c0_0] : memref<16x34xf32, #tpu.memory_space<vmem>>, vector<16x34xf32>
    %c0_1 = arith.constant 0 : index
    %c0_2 = arith.constant 0 : index
    %1 = vector.load %arg2[%c0_1, %c0_2] : memref<34x32xf32, #tpu.memory_space<vmem>>, vector<34x32xf32>
    %cst = arith.constant dense<0.000000e+00> : vector<16x32xf32>
    %2 = tpu.matmul %0, %1, %cst {dimension_numbers = #tpu.dot_dimension_numbers<[1], [0], [0], [1], [0, 0, 1, 1], [], []>} : vector<16x34xf32>, vector<34x32xf32>, vector<16x32xf32> -> vector<16x32xf32>
    %c0_3 = arith.constant 0 : index
    %c0_4 = arith.constant 0 : index
    %3 = vector.load %arg3[%c0_3, %c0_4] : memref<1x32xf32, #tpu.memory_space<vmem>>, vector<1x32xf32>
    %4 = vector.broadcast %3 : vector<1x32xf32> to vector<16x32xf32>
    %5 = arith.addf %2, %4 : vector<16x32xf32>
    %cst_5 = arith.constant 0.000000e+00 : f32
    %6 = vector.broadcast %cst_5 : f32 to vector<16x32xf32>
    %7 = arith.maximumf %5, %6 : vector<16x32xf32>
    %c0_6 = arith.constant 0 : index
    %c0_7 = arith.constant 0 : index
    %8 = vector.load %arg4[%c0_6, %c0_7] : memref<32x32xf32, #tpu.memory_space<vmem>>, vector<32x32xf32>
    %cst_8 = arith.constant dense<0.000000e+00> : vector<16x32xf32>
    %9 = tpu.matmul %7, %8, %cst_8 {dimension_numbers = #tpu.dot_dimension_numbers<[1], [0], [0], [1], [0, 0, 1, 1], [], []>} : vector<16x32xf32>, vector<32x32xf32>, vector<16x32xf32> -> vector<16x32xf32>
    %c0_9 = arith.constant 0 : index
    %c0_10 = arith.constant 0 : index
    %10 = vector.load %arg5[%c0_9, %c0_10] : memref<1x32xf32, #tpu.memory_space<vmem>>, vector<1x32xf32>
    %11 = vector.broadcast %10 : vector<1x32xf32> to vector<16x32xf32>
    %12 = arith.addf %9, %11 : vector<16x32xf32>
    %cst_11 = arith.constant 0.000000e+00 : f32
    %13 = vector.broadcast %cst_11 : f32 to vector<16x32xf32>
    %14 = arith.maximumf %12, %13 : vector<16x32xf32>
    %c0_12 = arith.constant 0 : index
    %c0_13 = arith.constant 0 : index
    %15 = vector.load %arg6[%c0_12, %c0_13] : memref<32x32xf32, #tpu.memory_space<vmem>>, vector<32x32xf32>
    %cst_14 = arith.constant dense<0.000000e+00> : vector<16x32xf32>
    %16 = tpu.matmul %14, %15, %cst_14 {dimension_numbers = #tpu.dot_dimension_numbers<[1], [0], [0], [1], [0, 0, 1, 1], [], []>} : vector<16x32xf32>, vector<32x32xf32>, vector<16x32xf32> -> vector<16x32xf32>
    %c0_15 = arith.constant 0 : index
    %c0_16 = arith.constant 0 : index
    %17 = vector.load %arg7[%c0_15, %c0_16] : memref<1x32xf32, #tpu.memory_space<vmem>>, vector<1x32xf32>
    %18 = vector.broadcast %17 : vector<1x32xf32> to vector<16x32xf32>
    %19 = arith.addf %16, %18 : vector<16x32xf32>
    %cst_17 = arith.constant 0.000000e+00 : f32
    %20 = vector.broadcast %cst_17 : f32 to vector<16x32xf32>
    %21 = arith.maximumf %19, %20 : vector<16x32xf32>
    %c0_18 = arith.constant 0 : index
    %c0_19 = arith.constant 0 : index
    %22 = vector.load %arg8[%c0_18, %c0_19] : memref<32x256xf32, #tpu.memory_space<vmem>>, vector<32x256xf32>
    %cst_20 = arith.constant dense<0.000000e+00> : vector<16x256xf32>
    %23 = tpu.matmul %21, %22, %cst_20 {dimension_numbers = #tpu.dot_dimension_numbers<[1], [0], [0], [1], [0, 0, 1, 1], [], []>} : vector<16x32xf32>, vector<32x256xf32>, vector<16x256xf32> -> vector<16x256xf32>
    %c0_21 = arith.constant 0 : index
    %c0_22 = arith.constant 0 : index
    %24 = vector.load %arg9[%c0_21, %c0_22] : memref<1x256xf32, #tpu.memory_space<vmem>>, vector<1x256xf32>
    %25 = vector.broadcast %24 : vector<1x256xf32> to vector<16x256xf32>
    %26 = arith.addf %23, %25 : vector<16x256xf32>
    %27 = vector.extract_strided_slice %26 {offsets = [0, 0], sizes = [16, 128], strides = [1, 1]} : vector<16x256xf32> to vector<16x128xf32>
    %28 = vector.extract_strided_slice %26 {offsets = [0, 128], sizes = [16, 128], strides = [1, 1]} : vector<16x256xf32> to vector<16x128xf32>
    %c0_23 = arith.constant 0 : index
    %29 = memref.load %arg10[%c0_23] : memref<2xf32, #tpu.memory_space<smem>>
    %c1 = arith.constant 1 : index
    %30 = memref.load %arg10[%c1] : memref<2xf32, #tpu.memory_space<smem>>
    %31 = vector.broadcast %29 : f32 to vector<16x128xf32>
    %32 = arith.subf %31, %28 : vector<16x128xf32>
    %cst_24 = arith.constant 0.000000e+00 : f32
    %33 = vector.broadcast %cst_24 : f32 to vector<16x128xf32>
    %34 = arith.maximumf %32, %33 : vector<16x128xf32>
    %35 = math.absf %32 : vector<16x128xf32>
    %cst_25 = arith.constant 0.000000e+00 : f32
    %36 = vector.broadcast %cst_25 : f32 to vector<16x128xf32>
    %37 = arith.subf %36, %35 : vector<16x128xf32>
    %38 = math.exp %37 : vector<16x128xf32>
    %39 = math.log1p %38 : vector<16x128xf32>
    %40 = arith.addf %34, %39 : vector<16x128xf32>
    %41 = vector.broadcast %29 : f32 to vector<16x128xf32>
    %42 = arith.subf %41, %40 : vector<16x128xf32>
    %43 = vector.broadcast %30 : f32 to vector<16x128xf32>
    %44 = arith.subf %42, %43 : vector<16x128xf32>
    %cst_26 = arith.constant 0.000000e+00 : f32
    %45 = vector.broadcast %cst_26 : f32 to vector<16x128xf32>
    %46 = arith.maximumf %44, %45 : vector<16x128xf32>
    %47 = math.absf %44 : vector<16x128xf32>
    %cst_27 = arith.constant 0.000000e+00 : f32
    %48 = vector.broadcast %cst_27 : f32 to vector<16x128xf32>
    %49 = arith.subf %48, %47 : vector<16x128xf32>
    %50 = math.exp %49 : vector<16x128xf32>
    %51 = math.log1p %50 : vector<16x128xf32>
    %52 = arith.addf %46, %51 : vector<16x128xf32>
    %53 = vector.broadcast %30 : f32 to vector<16x128xf32>
    %54 = arith.addf %53, %52 : vector<16x128xf32>
    %55 = math.exp %54 : vector<16x128xf32>
    %56 = tpu.concatenate %27, %55 in 1 : vector<16x128xf32>, vector<16x128xf32> -> vector<16x256xf32>
    %c0_28 = arith.constant 0 : index
    %c0_29 = arith.constant 0 : index
    %57 = vector.load %arg11[%c0_28, %c0_29] : memref<16x256xf32, #tpu.memory_space<vmem>>, vector<16x256xf32>
    tpu.vector_store %arg11[%c0_28, %c0_29], %56 {strides = array<i32>} : memref<16x256xf32, #tpu.memory_space<vmem>>, vector<16x256xf32>,
    return
  }
  func.func @transform_0(%arg0: i32) -> (i32, i32) {
    %c0_i32 = arith.constant 0 : i32
    %c0_i32_0 = arith.constant 0 : i32
    return %arg0, %c0_i32 : i32, i32
  }
  func.func @transform_1(%arg0: i32) -> (i32, i32) {
    %c0_i32 = arith.constant 0 : i32
    %c0_i32_0 = arith.constant 0 : i32
    %c0_i32_1 = arith.constant 0 : i32
    return %c0_i32, %c0_i32_0 : i32, i32
  }
  func.func @transform_2(%arg0: i32) -> (i32, i32) {
    %c0_i32 = arith.constant 0 : i32
    %c0_i32_0 = arith.constant 0 : i32
    %c0_i32_1 = arith.constant 0 : i32
    return %c0_i32, %c0_i32_0 : i32, i32
  }
  func.func @transform_3(%arg0: i32) -> (i32, i32) {
    %c0_i32 = arith.constant 0 : i32
    %c0_i32_0 = arith.constant 0 : i32
    %c0_i32_1 = arith.constant 0 : i32
    return %c0_i32, %c0_i32_0 : i32, i32
  }
  func.func @transform_4(%arg0: i32) -> (i32, i32) {
    %c0_i32 = arith.constant 0 : i32
    %c0_i32_0 = arith.constant 0 : i32
    %c0_i32_1 = arith.constant 0 : i32
    return %c0_i32, %c0_i32_0 : i32, i32
  }
  func.func @transform_5(%arg0: i32) -> (i32, i32) {
    %c0_i32 = arith.constant 0 : i32
    %c0_i32_0 = arith.constant 0 : i32
    %c0_i32_1 = arith.constant 0 : i32
    return %c0_i32, %c0_i32_0 : i32, i32
  }
  func.func @transform_6(%arg0: i32) -> (i32, i32) {
    %c0_i32 = arith.constant 0 : i32
    %c0_i32_0 = arith.constant 0 : i32
    %c0_i32_1 = arith.constant 0 : i32
    return %c0_i32, %c0_i32_0 : i32, i32
  }
  func.func @transform_7(%arg0: i32) -> (i32, i32) {
    %c0_i32 = arith.constant 0 : i32
    %c0_i32_0 = arith.constant 0 : i32
    %c0_i32_1 = arith.constant 0 : i32
    return %c0_i32, %c0_i32_0 : i32, i32
  }
  func.func @transform_8(%arg0: i32) -> (i32, i32) {
    %c0_i32 = arith.constant 0 : i32
    %c0_i32_0 = arith.constant 0 : i32
    %c0_i32_1 = arith.constant 0 : i32
    return %c0_i32, %c0_i32_0 : i32, i32
  }
  func.func @transform_9(%arg0: i32) -> i32 {
    %c0_i32 = arith.constant 0 : i32
    %c0_i32_0 = arith.constant 0 : i32
    return %c0_i32 : i32
  }
  func.func @transform_10(%arg0: i32) -> (i32, i32) {
    %c0_i32 = arith.constant 0 : i32
    %c0_i32_0 = arith.constant 0 : i32
    return %arg0, %c0_i32 : i32, i32
  }
}

</mosaic_0001>

<bundles_post_ra>
// kernel: tpu_custom_call.1
= control target key start
LH: loop header
LB: loop body
LE: loop exit
PB: predicated region body
PF: predicated region fallthrough
CT: control target
= control target key end

     0   :  { %15 = vsyncpa [#allocation3], 0  ;;  %s1920_s0 = inlined_call_operand.vmem [shape: f32[32,34], index: 0, kind: input, shape index: {}]   ;;  %s1921_s1 = inlined_call_operand.vmem [shape: f32[34,32], index: 1, kind: input, shape index: {}]   ;;  %s1922_s2 = inlined_call_operand.hbm [shape: f32[1,32], index: 2, kind: input, shape index: {}]   ;;  %s1923_s3 = inlined_call_operand.hbm [shape: f32[32,32], index: 3, kind: input, shape index: {}]   ;;  %s1924_s4 = inlined_call_operand.hbm [shape: f32[1,32], index: 4, kind: input, shape index: {}]   ;;  %s1925_s5 = inlined_call_operand.hbm [shape: f32[32,32], index: 5, kind: input, shape index: {}]   ;;  %s1926_s6 = inlined_call_operand.hbm [shape: f32[1,32], index: 6, kind: input, shape index: {}]   ;;  %s1927_s7 = inlined_call_operand.vmem [shape: f32[32,256], index: 7, kind: input, shape index: {}]   ;;  %s1928_s8 = inlined_call_operand.vmem [shape: f32[1,256], index: 8, kind: input, shape index: {}]   ;;  %s1929_s9 = inlined_call_operand.vmem [shape: f32[2], index: 9, kind: input, shape index: {}]   ;;  %s1930_s10 = inlined_call_operand.hbm [shape: f32[32,256], index: 10, kind: output, shape index: {}]  }
   0x1   :  { %16 = vsyncpa [#allocation7], 0 }
   0x2   :  { %17 = vsyncpa [#allocation10], 0 }
   0x3   :  { %18 = vsyncpa [#allocation5], 0 }
   0x4   :  { %19 = vsyncpa [#allocation4], 0 }
   0x5   :  { %21 = vsyncpa [#allocation4 + $0x1], 0  ;;  %s1608_s13 = smov 0   ;;  %s1610_s14 = smov 0  }
   0x6   :  { %s1612_s15 = smov 0   ;;  %s1614_s16 = smov 0  }
   0x7 LB: > { %1940 = sst [smem:[#allocation19_spill]] %s1527_s13  ;;  %s1629_s17 = sadd.s32 4294967295, %s1539_s16   ;;  %s1539_s16 = sphi %s1614_s16, %s1965_s16   ;;  %s1535_s15 = sphi %s1612_s15, %s1967_s15   ;;  %s1531_s14 = sphi %s1610_s14, %s1969_s14   ;;  %s1527_s13 = sphi %s1608_s13, %s1968_s13  }
   0x8   : > { %1941 = sst [smem:[#allocation20_spill]] %s1535_s15  ;;  %s1055_s18 = sadd.s32 4294967294, %s1539_s16  }
   0x9   : > { %1942 = sst [smem:[#allocation21_spill]] %s1539_s16  ;;  %s1633_s19 = sadd.s32 1, %s1539_s16  }
   0xa   : > { %1943 = sst [smem:[#allocation22_spill]] %s1633_s19  ;;  %s249_s20 = sadd.s32 1, %s1535_s15 }
   0xb   : > { %s246_s21 = ssub.s32 %s1539_s16, %s1633_s19  ;;  %p259_p0 = scmp.ne.s32.totalorder %s1535_s15, %s1531_s14 }
   0xc   : > { %p247_p1 = scmp.eq.s32.totalorder %s246_s21, 0  ;;  %p260_p2 = scmp.eq.s32.totalorder %s1629_s17, 1 }
   0xd   : > { %p265_p3 = scmp.ne.s32.totalorder %s1531_s14, %s1527_s13  ;;  %p266_p4 = scmp.eq.s32.totalorder %s1055_s18, 1 }
   0xe   : > { %s1644_s22 = scalar_select %p247_p1, %s1535_s15, %s249_s20  }
   0xf   : > { %p1646_p5 = por %p260_p2, %p259_p0  ;;  %p1650_p6 = por %p266_p4, %p265_p3 }
  0x10   : > { %1944 = sst [smem:[#allocation23_spill]] %s1644_s22  ;;  %p1056_p7 = scmp.ge.s32.totalorder %s1539_s16, 1 }
  0x11   : > { %s1945_s23 = scalar_select %p1646_p5, 1, 0 }
  0x12   : > { %s1946_s24 = scalar_select %p1650_p6, 1, 0 }
  0x13   : > { %p273_p8 = scmp.lt.s32.totalorder %s1539_s16, 3  ;;  %p1932_p9 = scmp.eq.s32.totalorder %s1629_s17, 0 }
  0x14   : > { %1947 = sst [smem:[#allocation24_spill]] %s1946_s24  ;;  %s1541_s26 = smov [#allocation6]  }
  0x15   : > { %p1657_p10 = pnand %p1056_p7, %p273_p8  ;;  %s299_s27 = sshll.u32 %s1541_s26, 4  ;;  %s1663_s27 = int_to_ptr.vmem [resolvable:$true] %s299_s27 }
  0x16   : > { %s1542_s29 = smov [#allocation9]   ;;  %s1543_s11 = smov [#allocation2]  }
  0x17   : > { %s1948_s25 = scalar_select %p1657_p10, 1, 0 }
  0x18   : > { %p1207_p11 = pneg %p1657_p10  ;;  %s323_s30 = sshll.u32 %s1542_s29, 4  ;;  %s1671_s30 = int_to_ptr.vmem [resolvable:$true] %s323_s30 }
  0x19   : > { %s1673_s12 = sshll.u32 %s1543_s11, 4  ;;  %s1306_s21 = scalar_lea.hbm %s1923_s3, 512  ;;  %s290_s12 = int_to_ptr.vmem [resolvable:$true] %s1673_s12 }
  0x1a   : > { %p1667_p12 = pnand %p1932_p9, %p1207_p11  ;;  %p1307_p13 = scmp.ne.s32.totalorder %s1923_s3, %s1306_s21 }
  0x1b   : > { %p1313_p3 = scmp.lt.u32.totalorder %s1306_s21, %s1923_s3 }
  0x1c   : > { %p1683_p0 = pneg %p1667_p12 }
  0x1e   : > { %p1309_p1 = pnand %p1683_p0, %p1307_p13 }
  0x20   : > { %p1310_p2 = pneg %p1309_p1 }
  0x22   : > { %p1315_p4 = pnand %p1313_p3, %p1310_p2 }
  0x24   : > { %1318 = shalt.err (!%p1315_p4)
}
  0x25   : > { %s1319_s22 = scalar_lea.vmem %s1663_s27, 512  ;;  %p1327_p9 = scmp.lt.s32.totalorder %s1663_s27, %s1663_s27 }
  0x26   : > { %p1320_p7 = scmp.ne.s32.totalorder %s1663_s27, %s1319_s22  ;;  %p1328_p6 = scmp.lt.s32.totalorder %s1319_s22, %s1319_s22 }
  0x28   : > { %p1322_p8 = pnand %p1320_p7, %p1683_p0  ;;  %p1329_p13 = por %p1328_p6, %p1327_p9 }
  0x2a   : > { %p1323_p11 = pneg %p1322_p8 }
  0x2c   : > { %p1330_p1 = pnand %p1329_p13, %p1323_p11 }
  0x2e   : > { %1333 = shalt.err (!%p1330_p1)
}
  0x2f   : > { %s1544_s18 = smov 128   ;;  %s1545_s20 = smov 8  }
  0x30   : > { %1213 = dma.hbm_to_vmem [thread:$0]  (!%p1667_p12), %s1923_s3, 512, %s1663_s27, [#allocation7], %s1544_s18, %s1544_s18, %s1545_s20  }
  0x31   : > { %s1334_s19 = scalar_lea.hbm %s1925_s5, 512 }
  0x32   : > { %p1335_p6 = scmp.ne.s32.totalorder %s1925_s5, %s1334_s19  ;;  %p1341_p3 = scmp.lt.u32.totalorder %s1334_s19, %s1925_s5 }
  0x34   : > { %p1337_p9 = pnand %p1335_p6, %p1683_p0 }
  0x36   : > { %p1338_p2 = pneg %p1337_p9 }
  0x38   : > { %p1343_p4 = pnand %p1341_p3, %p1338_p2 }
  0x3a   : > { %1346 = shalt.err (!%p1343_p4)
}
  0x3b   : > { %s1347_s27 = scalar_lea.vmem %s1671_s30, 512  ;;  %p1355_p13 = scmp.lt.s32.totalorder %s1671_s30, %s1671_s30 }
  0x3c   : > { %p1348_p7 = scmp.ne.s32.totalorder %s1671_s30, %s1347_s27  ;;  %p1356_p1 = scmp.lt.s32.totalorder %s1347_s27, %s1347_s27 }
  0x3e   : > { %p1350_p8 = pnand %p1348_p7, %p1683_p0  ;;  %p1357_p6 = por %p1356_p1, %p1355_p13 }
  0x40   : > { %p1351_p11 = pneg %p1350_p8 }
  0x42   : > { %p1358_p9 = pnand %p1357_p6, %p1351_p11 }
  0x44   : > { %1361 = shalt.err (!%p1358_p9)
}
  0x45   : > { %1219 = dma.hbm_to_vmem [thread:$0]  (!%p1667_p12), %s1925_s5, 512, %s1671_s30, [#allocation10], %s1544_s18, %s1544_s18, %s1545_s20  }
  0x46   : > { %s1362_s21 = scalar_lea.hbm %s1922_s2, 16 }
  0x47   : > { %p1363_p2 = scmp.ne.s32.totalorder %s1922_s2, %s1362_s21  ;;  %p1369_p7 = scmp.lt.u32.totalorder %s1362_s21, %s1922_s2 }
  0x49   : > { %p1365_p3 = pnand %p1363_p2, %p1683_p0 }
  0x4b   : > { %p1366_p4 = pneg %p1365_p3 }
  0x4d   : > { %p1371_p8 = pnand %p1369_p7, %p1366_p4 }
  0x4f   : > { %1374 = shalt.err (!%p1371_p8)
}
  0x50   : > { %s1375_s27 = scalar_lea.vmem %s290_s12, 16  ;;  %s1382_s30 = scalar_lea.vmem %s290_s12, 32 }
  0x51   : > { %p1376_p11 = scmp.ne.s32.totalorder %s290_s12, %s1375_s27  ;;  %p1383_p6 = scmp.lt.s32.totalorder %s290_s12, %s290_s12 }
  0x52   : > { %p1384_p9 = scmp.lt.s32.totalorder %s1382_s30, %s1375_s27 }
  0x53   : > { %p1378_p13 = pnand %p1376_p11, %p1683_p0 }
  0x54   : > { %p1385_p5 = por %p1384_p9, %p1383_p6 }
  0x55   : > { %p1379_p1 = pneg %p1378_p13 }
  0x57   : > { %p1386_p10 = pnand %p1385_p5, %p1379_p1 }
  0x59   : > { %1389 = shalt.err (!%p1386_p10)
}
  0x5a   : > { %1210 = dma.hbm_to_vmem [thread:$0]  (!%p1667_p12), %s1922_s2, 16, %s290_s12, [#allocation3]  }
  0x5b   : > { %s1546_s13 = smov [#allocation8]   ;;  %s1547_s19 = smov [#allocation11]  }
  0x5c   : > { %s313_s16 = sshll.u32 %s1546_s13, 4  ;;  %s337_s24 = sshll.u32 %s1547_s19, 4  ;;  %s314_s16 = int_to_ptr.vmem [resolvable:$true] %s313_s16  ;;  %s338_s24 = int_to_ptr.vmem [resolvable:$true] %s337_s24 }
  0x5d   : > { %s1390_s29 = scalar_lea.hbm %s1924_s4, 16 }
  0x5e   : > { %p1391_p5 = scmp.ne.s32.totalorder %s1924_s4, %s1390_s29  ;;  %p1397_p3 = scmp.lt.u32.totalorder %s1390_s29, %s1924_s4 }
  0x60   : > { %p1393_p10 = pnand %p1391_p5, %p1683_p0 }
  0x62   : > { %p1394_p2 = pneg %p1393_p10 }
  0x64   : > { %p1399_p4 = pnand %p1397_p3, %p1394_p2 }
  0x66   : > { %1402 = shalt.err (!%p1399_p4)
}
  0x67   : > { %s1403_s12 = scalar_lea.vmem %s314_s16, 16  ;;  %s1410_s18 = scalar_lea.vmem %s314_s16, 32 }
  0x68   : > { %p1404_p7 = scmp.ne.s32.totalorder %s314_s16, %s1403_s12  ;;  %p1411_p13 = scmp.lt.s32.totalorder %s314_s16, %s314_s16 }
  0x69   : > { %p1412_p1 = scmp.lt.s32.totalorder %s1410_s18, %s1403_s12 }
  0x6a   : > { %p1406_p8 = pnand %p1404_p7, %p1683_p0 }
  0x6b   : > { %p1413_p6 = por %p1412_p1, %p1411_p13 }
  0x6c   : > { %p1407_p11 = pneg %p1406_p8 }
  0x6e   : > { %p1414_p9 = pnand %p1413_p6, %p1407_p11 }
  0x70   : > { %1417 = shalt.err (!%p1414_p9)
}
  0x71   : > { %1216 = dma.hbm_to_vmem [thread:$0]  (!%p1667_p12), %s1924_s4, 16, %s314_s16, [#allocation7]  }
  0x72   : > { %s354_s26 = sshll.u32 %s1929_s9, 4  ;;  %s1418_s22 = scalar_lea.hbm %s1926_s6, 16  ;;  %s355_s26 = int_to_ptr.vmem [resolvable:$true] %s354_s26 }
  0x73   : > { %p1419_p5 = scmp.ne.s32.totalorder %s1926_s6, %s1418_s22  ;;  %p1425_p3 = scmp.lt.u32.totalorder %s1418_s22, %s1926_s6 }
  0x75   : > { %p1421_p10 = pnand %p1419_p5, %p1683_p0 }
  0x77   : > { %p1422_p2 = pneg %p1421_p10 }
  0x79   : > { %p1427_p4 = pnand %p1425_p3, %p1422_p2 }
  0x7b   : > { %1430 = shalt.err (!%p1427_p4)
}
  0x7c   : > { %s1431_s16 = scalar_lea.vmem %s338_s24, 16  ;;  %s1438_s20 = scalar_lea.vmem %s338_s24, 32 }
  0x7d   : > { %p1432_p7 = scmp.ne.s32.totalorder %s338_s24, %s1431_s16  ;;  %p1439_p13 = scmp.lt.s32.totalorder %s338_s24, %s338_s24 }
  0x7e   : > { %p1440_p1 = scmp.lt.s32.totalorder %s1438_s20, %s1431_s16 }
  0x7f   : > { %p1434_p8 = pnand %p1432_p7, %p1683_p0 }
  0x80   : > { %p1441_p6 = por %p1440_p1, %p1439_p13 }
  0x81   : > { %p1435_p11 = pneg %p1434_p8 }
  0x83   : > { %p1442_p9 = pnand %p1441_p6, %p1435_p11 }
  0x85   : > { %1445 = shalt.err (!%p1442_p9)
}
  0x86   : > { %1222 = dma.hbm_to_vmem [thread:$0]  (!%p1667_p12), %s1926_s6, 16, %s338_s24, [#allocation10]  }
  0x87   : > { %s1446_s21 = scalar_lea.vmem %s355_s26, 16  ;;  %p1454_p3 = scmp.lt.s32.totalorder %s355_s26, %s355_s26 }
  0x88   : > { %p1447_p5 = scmp.ne.s32.totalorder %s355_s26, %s1446_s21  ;;  %p1455_p4 = scmp.lt.s32.totalorder %s1446_s21, %s1446_s21 }
  0x8a   : > { %p1449_p10 = pnand %p1447_p5, %p1683_p0  ;;  %p1456_p7 = por %p1455_p4, %p1454_p3 }
  0x8c   : > { %p1450_p2 = pneg %p1449_p10 }
  0x8e   : > { %p1457_p8 = pnand %p1456_p7, %p1450_p2 }
  0x90   : > { %1460 = shalt.err (!%p1457_p8)
}
  0x91   : > { %s1548_s29 = smov [#allocation12]   ;;  %p1951_p11 = scmp.ne.s32.totalorder %s1948_s25, 0 }
  0x92   : > { %1225 = dma.vmem_to_smem (!%p1667_p12), %s355_s26, 16, %s1548_s29, [#allocation5]  }
  0x93   : > { %376 = sbr.rel (%p1951_p11) target bundleno = 1159 (0x487), region = 60  ;;  %p1952_p13 = scmp.eq.s32.totalorder (!%p1951_p11), %s1629_s17, 0 }
  0x9a   : > { %1506 = dma.done.wait (%p1952_p13), [#allocation3], 16   ;;  %p1953_p1 = pmov %p1952_p13 }
  0x9c   : > { %1508 = vsyncadd (%p1953_p1), [#allocation3], 4294967280  ;;  %p1954_p0 = pmov %p1953_p1 }
  0x9e   : > { %1510 = dma.done.wait (%p1954_p0), [#allocation7], 528   ;;  %p1955_p6 = pmov %p1954_p0 }
  0x9f   : > { %p1956_p9 = pmov %p1954_p0 }
  0xa0   : > { %1512 = vsyncadd (%p1955_p6), [#allocation7], 4294966768 }
  0xa1   : > { %1514 = dma.done.wait (%p1956_p9), [#allocation10], 528   ;;  %p1957_p12 = pmov %p1954_p0 }
  0xa2   : > { %p1958_p5 = pmov %p1954_p0 }
  0xa3   : > { %1516 = vsyncadd (%p1957_p12), [#allocation10], 4294966768 }
  0xa4   : > { %1518 = dma.done.wait (%p1958_p5), [#allocation5], 16   ;;  %p1959_p10 = pmov %p1954_p0 }
  0xa6   : > { %1520 = vsyncadd (%p1959_p10), [#allocation5], 4294967280 }
  0xa7   : > { %402 = sfence }
  0xa8   : > { %v444_v0 = vld [vmem:[%s1921_s1] sm:$0xff]  ;;  %v445_v1 = vld [vmem:[%s1921_s1 + $0x8] sm:$0xff]  ;;  %v446_v2 = vld [vmem:[%s1921_s1 + $0x10] sm:$0xff]  ;;  %s1072_s22 = sshll.u32 %s1629_s17, 1  ;;  %vm456_vm0 = vcmask 277504   ;;  %vm463_vm1 = vcmask 1041408   ;;  %v743_v55 = vlaneseq }
  0xa9   : > { %v1149_v3 = vpack.c.bf16 %v445_v1, %v444_v0  ;;  %v447_v4 = vld [vmem:[%s1921_s1 + $0x18] sm:$0xff]  ;;  %p436_p2 = scmp.lt.s32.totalorder %s1072_s22, 3  ;;  %v544_v5 = vld [vmem:[#allocation6] sm:$0xff]  ;;  %v545_v7 = vld [vmem:[#allocation6 + $0x8] sm:$0xff]  ;;  %vm555_vm2 = vcmask 261120   ;;  %v1549_v47 = vmov 0.0  }
  0xaa   : > { %v1153_v6 = vpack.c.bf16 %v447_v4, %v446_v2  ;;  %v1157_v8 = vpack.c.bf16 %v545_v7, %v544_v5  ;;  %v448_v9 = vld [vmem:[%s1921_s1 + $0x20] sm:$0x3]  ;;  %v546_v12 = vld [vmem:[#allocation6 + $0x10] sm:$0xff]  ;;  %v639_v15 = vld [vmem:[#allocation9] sm:$0xff]  ;;  %v744_v56 = vshrl.u32 %v743_v55, 7  ;;  %s432_s21 = sand.u32 1, %s1531_s14  }
  0xab   : > { %1150 = vmatprep.subr.bf16.mxu0 %v1149_v3  ;;  %s1971_s22 = smov (!%p436_p2, %s1072_s22), 3  ;;  %v547_v13 = vld [vmem:[#allocation6 + $0x18] sm:$0xff]  ;;  %v640_v16 = vld [vmem:[#allocation9 + $0x8] sm:$0xff]  ;;  %v1078_v34 = vld [vmem:[#allocation8] ss:$0 sm:$0xff]  ;;  %s1071_s25 = sshll.u32 %s432_s21, 5 }
  0xac   : > { %1152 = vmatpush3.bf16.msra.mxu0 %v1149_v3  ;;  %s1073_s12 = sshll.u32 %s1971_s22, 3  ;;  %1158 = vmatprep.subr.bf16.mxu1 %v1157_v8  ;;  %v1161_v14 = vpack.c.bf16 %v547_v13, %v546_v12  ;;  %v1165_v17 = vpack.c.bf16 %v640_v16, %v639_v15  ;;  %v1074_v18 = vld [vmem:[#allocation2] ss:$0 sm:$0xff]  ;;  %v641_v25 = vld [vmem:[#allocation9 + $0x10] sm:$0xff]  ;;  %v734_v28 = vld [vmem:[%s1927_s7 + $0x8] sm:$0xff]  ;;  %v745_v57 = vsub.s32 0, %v744_v56 }
  0xad   : > { %1154 = vmatprep.subr.bf16.mxu0 %v1153_v6  ;;  %s439_s19 = scalar_lea.vmem %s1920_s0, %s1073_s12  ;;  %1160 = vmatpush3.bf16.msra.mxu1 %v1157_v8  ;;  %v642_v26 = vld [vmem:[#allocation9 + $0x18] sm:$0xff]  ;;  %v735_v32 = vld [vmem:[%s1927_s7 + $0x10] sm:$0xff]  ;;  %v738_v41 = vld [vmem:[%s1927_s7 + $0x28] sm:$0xff]  ;;  %v749_v59 = vsub.s32 1, %v744_v56  ;;  %s1862_s28 = scalar_lea.vmem [#allocation13], %s1071_s25 }
  0xae   : > { %v442_v10 = vld [vmem:[%s439_s19] sm:$0xff]  ;;  %v443_v11 = vld [vmem:[%s439_s19 + $0x8] sm:$0xff]  ;;  %1162 = vmatprep.subr.bf16.mxu1 %v1161_v14  ;;  %v1169_v27 = vpack.c.bf16 %v642_v26, %v641_v25  ;;  %v736_v29 = vld [vmem:[%s1927_s7 + $0x18] sm:$0xff]  ;;  %s836_s19 = sld [smem:[#allocation12]]  ;;  %s1086_s24 = sld [smem:[#allocation12 + $0x1]] }
  0xaf   : > { %1124 = vmatprep.mubr.msk.f32.mxu0 %vm456_vm0, %v442_v10  ;;  %v733_v30 = vld [vmem:[%s1927_s7] sm:$0xff]  ;;  %v1173_v31 = vpack.c.bf16 %v736_v29, %v734_v28  ;;  %v740_v42 = vld [vmem:[%s1927_s7 + $0x38] sm:$0xff]  ;;  %v739_v45 = vld [vmem:[%s1927_s7 + $0x30] sm:$0xff]  ;;  %s931_s26 = sshll.u32 %s1862_s28, 4  ;;  %s1094_s11 = sshll.u32 %s1629_s17, 9  ;;  %s1869_s26 = int_to_ptr.vmem [resolvable:$true] %s931_s26 }
  0xb0   : > { %1156 = vmatpush3.bf16.msra.mxu0 %v1153_v6  ;;  %v1175_v33 = vpack.c.bf16 %v735_v32, %v733_v30  ;;  %v1177_v43 = vpack.c.bf16 %v740_v42, %v738_v41  ;;  %v737_v44 = vld [vmem:[%s1927_s7 + $0x20] sm:$0xff]  ;;  %s1874_s30 = scalar_lea.hbm %s1930_s10, %s1094_s11  ;;  %s1879_s12 = scalar_lea.sflag [#allocation4], %s432_s21 }
  0xb1   : > { %1122 = vmatprep.subr.msk.mxu0 %vm463_vm1, %v448_v9  ;;  %1164 = vmatpush3.bf16.msra.mxu1 %v1161_v14  ;;  %v1179_v46 = vpack.c.bf16 %v739_v45, %v737_v44  ;;  %v1081_v48 = vld [vmem:[#allocation11] ss:$0 sm:$0xff]  ;;  %v741_v58 = vld [vmem:[%s1928_s8] sm:$0x3]  ;;  %s1461_s18 = scalar_lea.vmem %s1869_s26, 512  ;;  %p1960_p4 = scmp.ne.s32.totalorder %s1945_s23, 0 }
  0xb2   : > { %1166 = vmatprep.subr.bf16.mxu1 %v1165_v17  ;;  %v746_v60 = vrot.slane %v741_v58, %v745_v57  ;;  %v750_v61 = vrot.slane %v741_v58, %v749_v59  ;;  %p1462_p3 = scmp.ne.s32.totalorder %s1869_s26, %s1461_s18  ;;  %s1550_s17 = smov [#allocation13]  }
  0xb3   : > { %s1465_s16 = sshll.u32 %s1550_s17, 4  ;;  %s1466_s16 = int_to_ptr.vmem [resolvable:$false] %s1465_s16 }
  0xb4   : > { %1123 = vmatpush3.msk.msra.mxu0 %vm463_vm1, %v448_v9  ;;  %v838_v1 = vstv %s836_s19  ;;  %v873_v32 = vstv %s1086_s24  ;;  %p1463_p7 = pnand %p1462_p3, %p1960_p4  ;;  %s1467_s20 = scalar_lea.vmem %s1466_s16, 1024 }
  0xb5   : > { %1125 = vmatmul.mubr.msk.f32.vlgmr.msra.gmra.mrb[0].mxu0 %vm456_vm0, %v443_v11  ;;  %1174 = vmatprep.subr.bf16.mxu0 %v1173_v31  ;;  %p1468_p11 = scmp.lt.s32.totalorder %s1869_s26, %s1466_s16  ;;  %p1469_p13 = scmp.lt.s32.totalorder %s1467_s20, %s1461_s18 }
  0xb6   : > { %1176 = vmatpush1.bf16.msra.mxu0 %v1175_v33  ;;  %823 = vmatprep.mubr.f32.mxu0 %v1549_v47  ;;  %p1464_p8 = pneg %p1463_p7 }
  0xb7   : > { %1178 = vmatprep.subr.bf16.mxu0 %v1177_v43  ;;  %p1470_p1 = por %p1469_p13, %p1468_p11 }
  0xb9   : > { %p1471_p0 = pnand %p1470_p1, %p1464_p8 }
  0xba   : > { %1180 = vmatpush1.bf16.msra.mxu0 %v1179_v46 }
 0x188   : > { %v1126_v19 = vpop.f32.mrb[0].mxu0 }
 0x189   : > { %v539_v20 = vadd.f32 %v1126_v19, %v1074_v18  ;;  %v533_v21 = vpop.f32.mrb[1].mxu0 }
 0x18a   : > { %v534_v22 = vadd.f32 %v1074_v18, %v533_v21 }
 0x18b   : > { %v543_v24 = vmax.f32 %v539_v20, 0.0 }
 0x18c   : > { %v542_v23 = vmax.f32 %v534_v22, 0.0 }
 0x18e   : > { %1135 = vmatprep.mubr.msk.f32.mxu1 %vm555_vm2, %v542_v23 }
 0x18f   : > { %1136 = vmatmul.mubr.msk.f32.vlgmr.msra.gmra.mrb[0].mxu1 %vm555_vm2, %v543_v24 }
 0x190   : > { %1168 = vmatpush3.bf16.msra.mxu1 %v1165_v17 }
 0x191   : > { %1170 = vmatprep.subr.bf16.mxu1 %v1169_v27 }
 0x194   : > { %1172 = vmatpush3.bf16.msra.mxu1 %v1169_v27 }
 0x262   : > { %v1137_v35 = vpop.f32.mrb[0].mxu1 }
 0x263   : > { %v634_v36 = vadd.f32 %v1137_v35, %v1078_v34  ;;  %v628_v37 = vpop.f32.mrb[1].mxu1 }
 0x264   : > { %v629_v38 = vadd.f32 %v1078_v34, %v628_v37 }
 0x265   : > { %v638_v40 = vmax.f32 %v634_v36, 0.0 }
 0x266   : > { %v637_v39 = vmax.f32 %v629_v38, 0.0 }
 0x268   : > { %1146 = vmatprep.mubr.msk.f32.mxu1 %vm555_vm2, %v637_v39 }
 0x269   : > { %1147 = vmatmul.mubr.msk.f32.vlgmr.msra.gmra.mrb[2].mxu1 %vm555_vm2, %v638_v40 }
 0x33c   : > { %v1148_v49 = vpop.f32.mrb[2].mxu1 }
 0x33d   : > { %v722_v50 = vpop.f32.mrb[3].mxu1  ;;  %v728_v52 = vadd.f32 %v1148_v49, %v1081_v48 }
 0x33e   : > { %v723_v51 = vadd.f32 %v1081_v48, %v722_v50 }
 0x33f   : > { %v732_v54 = vmax.f32 %v728_v52, 0.0 }
 0x340   : > { %v731_v53 = vmax.f32 %v723_v51, 0.0 }
 0x342   : > { %1084 = vmatmul.mubr.msk.f32.vlgmr.msra.gmra.mrb[2].mxu0 %vm555_vm2, %v731_v53 }
 0x343   : > { %829 = vmatprep.mubr.f32.mxu0 %v1549_v47 }
 0x346   : > { %1085 = vmatmul.mubr.msk.f32.gmra.mrb[4].mxu0 %vm555_vm2, %v732_v54 }
 0x415   : > { %v825_v62 = vpop.f32.mrb[2].mxu0 }
 0x416   : > { %v826_v63 = vadd.f32 %v825_v62, %v746_v60  ;;  %v827_v0 = vpop.f32.mrb[3].mxu0 }
 0x417   : > { %v828_v2 = vadd.f32 %v827_v0, %v750_v61 }
 0x418   : > { %912 = vst [vmem:[%s1862_s28] sm:$0xff] %v826_v63 }
 0x419   : > { %v839_v3 = vsub.f32 %v838_v1, %v828_v2  ;;  %v831_v4 = vpop.f32.mrb[4].mxu0 }
 0x41a   : > { %v832_v5 = vadd.f32 %v831_v4, %v746_v60  ;;  %v833_v6 = vpop.f32.mrb[5].mxu0 }
 0x41b   : > { %v843_v7 = vand.u32 2147483647, %v839_v3  ;;  %v834_v8 = vadd.f32 %v833_v6, %v750_v61  ;;  %v841_v27 = vmax.f32 %v839_v3, 0.0 }
 0x41c   : > { %914 = vst [vmem:[%s1862_s28 + $0x10] sm:$0xff] %v832_v5 }
 0x41d   : > { %v845_v9 = vsub.f32 0.0, %v843_v7  ;;  %v840_v10 = vsub.f32 %v838_v1, %v834_v8 }
 0x41f   : > { %v847_v11 = vmul.f32 1.442695, %v845_v9  ;;  %v844_v12 = vand.u32 2147483647, %v840_v10  ;;  %v842_v36 = vmax.f32 %v840_v10, 0.0 }
 0x421   : > { %1286 = vpow2.f32 %v847_v11  ;;  %v846_v13 = vsub.f32 0.0, %v844_v12 }
 0x423   : > { %v849_v14 = vmul.f32 1.442695, %v846_v13 }
 0x425   : > { %1288 = vpow2.f32 %v849_v14 }
 0x42b   : > { %v1287_v15 = vpop.eup %1286 }
 0x42c   : > { %v851_v16 = vadd.f32 1.0, %v1287_v15  ;;  %v854_v19 = vmul.f32 -0.5, %v1287_v15  ;;  %v857_v22 = vand.u32 2147483647, %v1287_v15 }
 0x42e   : > { %1290 = vlog2.f32 %v851_v16  ;;  %v855_v20 = vadd.f32 1.0, %v854_v19  ;;  %vm858_vm3 = vcmp.lt.f32.partialorder %v857_v22, 0.0004427343 }
 0x42f   : > { %v1289_v17 = vpop.eup %1288 }
 0x430   : > { %v860_v18 = vadd.f32 1.0, %v1289_v17  ;;  %v863_v21 = vmul.f32 -0.5, %v1289_v17  ;;  %v856_v25 = vmul.f32 %v1287_v15, %v855_v20  ;;  %v866_v28 = vand.u32 2147483647, %v1289_v17 }
 0x432   : > { %1292 = vlog2.f32 %v860_v18  ;;  %v864_v26 = vadd.f32 1.0, %v863_v21  ;;  %vm867_vm4 = vcmp.lt.f32.partialorder %v866_v28, 0.0004427343 }
 0x434   : > { %v865_v34 = vmul.f32 %v1289_v17, %v864_v26 }
 0x438   : > { %v1291_v23 = vpop.eup %1290 }
 0x439   : > { %v853_v24 = vmul.f32 0.6931472, %v1291_v23 }
 0x43b   : > { %v859_v29 = vsel %vm858_vm3, %v856_v25, %v853_v24 }
 0x43c   : > { %v1293_v30 = vpop.eup %1292  ;;  %v869_v31 = vadd.f32 %v859_v29, %v841_v27 }
 0x43d   : > { %v862_v33 = vmul.f32 0.6931472, %v1293_v30 }
 0x43e   : > { %v871_v35 = vsub.f32 %v838_v1, %v869_v31 }
 0x43f   : > { %v868_v37 = vsel %vm867_vm4, %v865_v34, %v862_v33 }
 0x440   : > { %v874_v38 = vsub.f32 %v871_v35, %v873_v32  ;;  %v870_v39 = vadd.f32 %v868_v37, %v842_v36 }
 0x442   : > { %v878_v40 = vand.u32 2147483647, %v874_v38  ;;  %v872_v41 = vsub.f32 %v838_v1, %v870_v39  ;;  %v876_v60 = vmax.f32 %v874_v38, 0.0 }
 0x444   : > { %v880_v42 = vsub.f32 0.0, %v878_v40  ;;  %v875_v43 = vsub.f32 %v872_v41, %v873_v32 }
 0x446   : > { %v882_v44 = vmul.f32 1.442695, %v880_v42  ;;  %v879_v45 = vand.u32 2147483647, %v875_v43  ;;  %v877_v4 = vmax.f32 %v875_v43, 0.0 }
 0x448   : > { %1294 = vpow2.f32 %v882_v44  ;;  %v881_v46 = vsub.f32 0.0, %v879_v45 }
 0x44a   : > { %v884_v47 = vmul.f32 1.442695, %v881_v46 }
 0x44c   : > { %1296 = vpow2.f32 %v884_v47 }
 0x452   : > { %v1295_v48 = vpop.eup %1294 }
 0x453   : > { %v886_v49 = vadd.f32 1.0, %v1295_v48  ;;  %v889_v52 = vmul.f32 -0.5, %v1295_v48  ;;  %v892_v55 = vand.u32 2147483647, %v1295_v48 }
 0x455   : > { %1298 = vlog2.f32 %v886_v49  ;;  %v890_v53 = vadd.f32 1.0, %v889_v52  ;;  %vm893_vm5 = vcmp.lt.f32.partialorder %v892_v55, 0.0004427343 }
 0x456   : > { %v1297_v50 = vpop.eup %1296 }
 0x457   : > { %v895_v51 = vadd.f32 1.0, %v1297_v50  ;;  %v898_v54 = vmul.f32 -0.5, %v1297_v50  ;;  %v891_v58 = vmul.f32 %v1295_v48, %v890_v53  ;;  %v901_v61 = vand.u32 2147483647, %v1297_v50 }
 0x459   : > { %1300 = vlog2.f32 %v895_v51  ;;  %v899_v59 = vadd.f32 1.0, %v898_v54  ;;  %vm902_vm6 = vcmp.lt.f32.partialorder %v901_v61, 0.0004427343 }
 0x45b   : > { %v900_v2 = vmul.f32 %v1297_v50, %v899_v59 }
 0x45f   : > { %v1299_v56 = vpop.eup %1298 }
 0x460   : > { %v888_v57 = vmul.f32 0.6931472, %v1299_v56 }
 0x462   : > { %v894_v62 = vsel %vm893_vm5, %v891_v58, %v888_v57 }
 0x463   : > { %v1301_v63 = vpop.eup %1300  ;;  %v904_v0 = vadd.f32 %v894_v62, %v876_v60 }
 0x464   : > { %v897_v1 = vmul.f32 0.6931472, %v1301_v63 }
 0x465   : > { %v906_v3 = vadd.f32 %v904_v0, %v873_v32 }
 0x466   : > { %v903_v5 = vsel %vm902_vm6, %v900_v2, %v897_v1 }
 0x467   : > { %v908_v6 = vmul.f32 1.442695, %v906_v3  ;;  %v905_v7 = vadd.f32 %v903_v5, %v877_v4 }
 0x469   : > { %1302 = vpow2.f32 %v908_v6  ;;  %v907_v8 = vadd.f32 %v905_v7, %v873_v32 }
 0x46b   : > { %v910_v9 = vmul.f32 1.442695, %v907_v8 }
 0x46d   : > { %1304 = vpow2.f32 %v910_v9 }
 0x473   : > { %v1303_v10 = vpop.eup %1302 }
 0x474   : > { %913 = vst [vmem:[%s1862_s28 + $0x8] sm:$0xff] %v1303_v10 }
 0x477   : > { %v1305_v11 = vpop.eup %1304 }
 0x478   : > { %915 = vst [vmem:[%s1862_s28 + $0x18] sm:$0xff] %v1305_v11 }
 0x479   : > { %1474 = shalt.err (!%p1471_p0)
}
 0x47a   : > { %s1475_s13 = scalar_lea.hbm %s1874_s30, 512  ;;  %s1479_s29 = scalar_lea.hbm %s1930_s10, 1024 }
 0x47b   : > { %p1476_p6 = scmp.ne.s32.totalorder %s1874_s30, %s1475_s13  ;;  %p1480_p5 = scmp.lt.u32.totalorder %s1874_s30, %s1930_s10 }
 0x47c   : > { %p1481_p10 = scmp.lt.u32.totalorder %s1479_s29, %s1475_s13  ;;  %p1483_p3 = scmp.lt.u32.totalorder %s1475_s13, %s1874_s30 }
 0x47d   : > { %p1477_p9 = pnand %p1476_p6, %p1960_p4 }
 0x47e   : > { %p1482_p2 = por %p1481_p10, %p1480_p5 }
 0x47f   : > { %p1478_p12 = pneg %p1477_p9 }
 0x480   : > { %p1484_p7 = por %p1483_p3, %p1482_p2 }
 0x482   : > { %p1485_p8 = pnand %p1484_p7, %p1478_p12 }
 0x484   : > { %1488 = shalt.err (!%p1485_p8)
}
 0x485   : > { %s1551_s28 = smov 256   ;;  %s1552_s24 = smov 16  }
 0x486   : > { %1205 = dma.vmem_to_hbm [thread:$0]  (%p1960_p4), %s1869_s26, 512, %s1874_s30, %s1879_s12, %s1551_s28, %s1551_s28, %s1552_s24  }
 0x487 PF: > { %s1961_s11 = sld [smem:[#allocation21_spill]]  ;;  %s1962_s22 = sld [smem:[#allocation19_spill]] }
 0x488   : > { %s1963_s27 = sld [smem:[#allocation24_spill]] }
 0x48d   : > { %p1242_p11 = scmp.ge.s32.totalorder %s1961_s11, 2  ;;  %s946_s18 = sand.u32 1, %s1962_s22  }
 0x48e   : > { %p1964_p13 = scmp.ne.s32.totalorder %s1963_s27, 0  ;;  %s947_s17 = scalar_lea.sflag [#allocation4], %s946_s18 }
 0x490   : > { %p1227_p1 = pnand %p1242_p11, %p1964_p13 }
 0x492   : > { %1522 = dma.done.wait (!%p1227_p1), %s947_s17, 512  }
 0x493   : > { %1524 = vsyncadd (!%p1227_p1), %s947_s17, 4294966784  ;;  %s1965_s16 = sld [smem:[#allocation22_spill]]  ;;  %s1966_s20 = sld [smem:[#allocation20_spill]] }
 0x494   : > { %s1967_s15 = sld [smem:[#allocation23_spill]]  ;;  %s1968_s13 = smov %s1531_s14 }
 0x499   : > { %p24_p0 = scmp.ge.s32.totalorder %s1965_s16, 4   ;;  %s1969_s14 = smov %s1966_s20 }
 0x49b   :  { %26 = sbr.rel (!%p24_p0) target bundleno = 7 (0x7), region = 121 }
 0x4a2   :  { %952 = vsyncpa [#allocation3], 1 }
 0x4a3   :  { %954 = vsyncpa [#allocation3 + $0x1], 1 }
 0x4a4   :  { %955 = vsyncpa [#allocation7], 1 }
 0x4a5   :  { %956 = vsyncpa [#allocation10], 1 }
 0x4a6   :  { %957 = vsyncpa [#allocation4], 1 }
 0x4a7   :  { %959 = vsyncpa [#allocation4 + $0x1], 1 }
 0x4a8   :  { %960 = vsyncpa [#allocation5], 1 }
 0x4a9   :  { %962 = vsyncpa [#allocation5 + $0x1], 1 }

</bundles_post_ra>
